<compile_context>
chip_gen: v6e
topology: v6e:2x2x1
jax: 0.10.0
libtpu: 0.0.40
codegen_flags: <defaults>
</compile_context>

<pallas_src>
import math
import functools

import jax
import jax.numpy as jnp
from jax.experimental import pallas as pl
from jax.experimental.pallas import tpu as pltpu


def _pick_q_tile(seq_len):
    """Largest q-row tile <= 512 that divides S (full S for short sequences)."""
    if seq_len <= 512:
        return seq_len
    for t in (512, 256, 128, 64, 32, 16, 8):
        if seq_len % t == 0:
            return t
    return seq_len


def _bert_relusq_attn_kernel(hs_ref, wq_ref, bq_ref, wkv_ref, bkv_ref, out_ref,
                             q_ref, kv_ref, ctx_ref,
                             *, num_heads, head_dim, q_tile, scale):
    qi = pl.program_id(1)
    all_head = num_heads * head_dim

    # K/V projection for the whole sequence, once per batch element.  The qi
    # axis is the inner, sequential ("arbitrary") grid axis, so the kv scratch
    # persists for every q-row tile of this batch element.
    @pl.when(qi == 0)
    def _():
        x_full = hs_ref[...]                                        # (S, E)
        kv = jnp.dot(x_full, wkv_ref[...],
                     preferred_element_type=jnp.float32) + bkv_ref[...]
        kv_ref[...] = kv.astype(kv_ref.dtype)

    # Q projection for this q-row tile only; fold 1/sqrt(head_dim) into Q once
    # instead of scaling every (tq, S) score tile per head.
    row0 = pl.multiple_of(qi * q_tile, q_tile)
    xq = hs_ref[pl.ds(row0, q_tile), :]                             # (tq, E)
    q = (jnp.dot(xq, wq_ref[...],
                 preferred_element_type=jnp.float32) + bq_ref[...]) * scale
    q_ref[...] = q.astype(q_ref.dtype)

    # Per-head attention. Static unroll; each head's (tq, S) score buffer is
    # consumed by the ctx store into the scratch, so only one is live at a time.
    for h in range(num_heads):
        lo = h * head_dim
        qh = q_ref[:, lo:lo + head_dim]                             # (tq, Dh)
        kh = kv_ref[:, lo:lo + head_dim]                            # (S , Dh)
        vh = kv_ref[:, all_head + lo:all_head + lo + head_dim]      # (S , Dh)

        # Contract on the head dim directly -> no explicit K transpose.
        scores = jax.lax.dot_general(
            qh, kh, dimension_numbers=(((1,), (1,)), ((), ())),
            preferred_element_type=jnp.float32)                     # (tq, S)
        r = jnp.maximum(scores, 0.0)
        probs = (r * r).astype(vh.dtype)                            # 'relusq'
        # TODO(synk): dropout omitted (eval/inference mode -> identity).
        ctx_ref[:, lo:lo + head_dim] = jnp.dot(
            probs, vh, preferred_element_type=jnp.float32)          # (tq, Dh)

    # One lane-dense, full-width store of the context tile.
    out_ref[...] = ctx_ref[...].astype(out_ref.dtype)


def bert_self_attention_relusq(hidden_states, wq, bq, wk, bk, wv, bv, *,
                               num_heads, compute_dtype=jnp.bfloat16):
    """Forward of BertSelfAttentionSubstitute (relusq), self-attention path.

    hidden_states: (B, S, E)
    wq/wk/wv:      (E, A)   (already transposed from torch's (A, E) layout)
    bq/bk/bv:      (A,)
    compute_dtype: dtype of the MXU matmul operands (accumulation is f32).
    """
    B, S, E = hidden_states.shape
    A = wq.shape[1]
    assert A % num_heads == 0
    head_dim = A // num_heads
    out_dtype = hidden_states.dtype

    cdt = jnp.dtype(compute_dtype)
    cds = cdt.itemsize
    ods = jnp.dtype(out_dtype).itemsize

    # bf16 (or requested) operands for the MXU; biases stay f32 for the f32
    # accumulator path.
    x = hidden_states.astype(cdt)
    wq_c = wq.astype(cdt)
    wkv_c = jnp.concatenate([wk, wv], axis=1).astype(cdt)           # (E, 2A)
    bq2 = bq.reshape(1, A).astype(jnp.float32)
    bkv2 = jnp.concatenate([bk, bv], axis=0).reshape(1, 2 * A).astype(jnp.float32)

    tq = _pick_q_tile(S)
    nq = S // tq
    scale = 1.0 / math.sqrt(head_dim)

    kernel = functools.partial(
        _bert_relusq_attn_kernel, num_heads=num_heads, head_dim=head_dim,
        q_tile=tq, scale=scale)

    # Grid-invariant operands -> single-buffered (double-buffering data whose
    # index_map never changes is pure VMEM waste).
    wq_spec = pl.BlockSpec((E, A), lambda b, qi: (0, 0),
                           pipeline_mode=pl.Buffered(1))
    wkv_spec = pl.BlockSpec((E, 2 * A), lambda b, qi: (0, 0),
                            pipeline_mode=pl.Buffered(1))
    bq_spec = pl.BlockSpec((1, A), lambda b, qi: (0, 0),
                           pipeline_mode=pl.Buffered(1))
    bkv_spec = pl.BlockSpec((1, 2 * A), lambda b, qi: (0, 0),
                            pipeline_mode=pl.Buffered(1))

    # Explicit scoped-VMEM budget (resident blocks + scratches + score temps),
    # with headroom, clamped to v7x physical VMEM.
    need = (2 * S * E * cds                  # hidden block (double-buffered)
            + 2 * tq * A * ods               # output block (double-buffered)
            + 3 * E * A * cds + 3 * A * 4    # single-buffered weights + biases
            + tq * A * cds                   # q scratch
            + S * 2 * A * cds                # k|v scratch
            + tq * A * 4                     # ctx scratch (f32)
            + 2 * tq * S * 4)                # scores + probs transients
    vmem_budget = min(max(need * 3 // 2 + (2 << 20), 8 << 20), 64 << 20)

    flops = 2 * B * (3 * S * E * A + 2 * S * S * A)
    bytes_accessed = (B * S * E * cds + 3 * E * A * cds + 3 * A * 4
                      + B * S * A * ods)

    # TODO(synk): for B==1 inference on v7x megacore, a second "parallel"
    # head-pair grid axis would keep both TensorCores busy; omitted here to
    # keep the (8,128) block constraints valid for arbitrary head_dim.
    out = pl.pallas_call(
        kernel,
        out_shape=jax.ShapeDtypeStruct((B, S, A), out_dtype),
        grid_spec=pltpu.PrefetchScalarGridSpec(
            num_scalar_prefetch=0,
            grid=(B, nq),
            in_specs=[
                pl.BlockSpec((pl.Squeezed(), S, E), lambda b, qi: (b, 0, 0)),
                wq_spec, bq_spec,      # Q
                wkv_spec, bkv_spec,    # fused K|V
            ],
            out_specs=pl.BlockSpec((pl.Squeezed(), tq, A),
                                   lambda b, qi: (b, qi, 0)),
            scratch_shapes=[
                pltpu.VMEM((tq, A), cdt),           # Q tile
                pltpu.VMEM((S, 2 * A), cdt),        # K|V (whole sequence)
                pltpu.VMEM((tq, A), jnp.float32),   # ctx accumulator
            ],
        ),
        compiler_params=pltpu.CompilerParams(
            dimension_semantics=("parallel", "arbitrary"),
            vmem_limit_bytes=int(vmem_budget),
        ),
        cost_estimate=pl.CostEstimate(flops=int(flops), transcendentals=0,
                                      bytes_accessed=int(bytes_accessed)),
    )(x, wq_c, bq2, wkv_c, bkv2)

    # TODO(synk): attention_mask / head_mask / cross-attention / past_key_value
    # branches of the original forward are not implemented (None-path only).
    return out


if __name__ == "__main__":
    key = jax.random.PRNGKey(0)

    # Small shapes consistent with the module: batch=2, seq=8, hidden=32, 4 heads.
    B, S, E = 2, 8, 32
    H = 4
    A = E                      # all_head_size
    Dh = A // H                # attention_head_size

    ks = jax.random.split(key, 7)
    hidden = jax.random.normal(ks[0], (B, S, E), dtype=jnp.float32)
    wq = jax.random.normal(ks[1], (E, A), dtype=jnp.float32) / math.sqrt(E)
    bq = 0.1 * jax.random.normal(ks[2], (A,), dtype=jnp.float32)
    wk = jax.random.normal(ks[3], (E, A), dtype=jnp.float32) / math.sqrt(E)
    bk = 0.1 * jax.random.normal(ks[4], (A,), dtype=jnp.float32)
    wv = jax.random.normal(ks[5], (E, A), dtype=jnp.float32) / math.sqrt(E)
    bv = 0.1 * jax.random.normal(ks[6], (A,), dtype=jnp.float32)

    # Plain-JAX reference mirroring the PyTorch forward (replace_method='relusq').
    def ref_fn(xx):
        q = xx @ wq + bq
        k = xx @ wk + bk
        v = xx @ wv + bv

        def split_heads(t):
            return t.reshape(B, S, H, Dh).transpose(0, 2, 1, 3)   # (B, H, S, Dh)

        qh, kh, vh = split_heads(q), split_heads(k), split_heads(v)
        scores = jnp.einsum("bhqd,bhkd->bhqk", qh, kh) / math.sqrt(Dh)
        probs = jnp.maximum(scores, 0.0) ** 2
        ctx = jnp.einsum("bhqk,bhkd->bhqd", probs, vh)
        return ctx.transpose(0, 2, 1, 3).reshape(B, S, A)

    ref = ref_fn(hidden)

    # 1) Optimized path: bf16 MXU operands, f32 accumulation (looser tolerance).
    out_bf16 = bert_self_attention_relusq(
        hidden, wq, bq, wk, bk, wv, bv, num_heads=H,
        compute_dtype=jnp.bfloat16)
    jax.block_until_ready(out_bf16)
    assert out_bf16.shape == ref.shape and out_bf16.dtype == ref.dtype
    assert jnp.allclose(out_bf16, ref, atol=1e-1, rtol=5e-2)

    # 2) f32-operand path: tight numerical check of the kernel logic.
    out_f32 = bert_self_attention_relusq(
        hidden, wq, bq, wk, bk, wv, bv, num_heads=H,
        compute_dtype=jnp.float32)
    jax.block_until_ready(out_f32)
    assert out_f32.shape == ref.shape and out_f32.dtype == ref.dtype
    assert jnp.allclose(out_f32, ref, atol=1e-4, rtol=1e-4)

    print("KERNEL_OK")
</pallas_src>

<mosaic_0001>
module attributes {stable_mosaic.version = 11 : i64} {
  func.func @_bert_relusq_attn_kernel(%arg0: i32, %arg1: i32, %arg2: memref<1x8x32xbf16, #tpu.memory_space<vmem>>, %arg3: memref<32x32xbf16, #tpu.memory_space<vmem>>, %arg4: memref<1x32xf32, #tpu.memory_space<vmem>>, %arg5: memref<32x64xbf16, #tpu.memory_space<vmem>>, %arg6: memref<1x64xf32, #tpu.memory_space<vmem>>, %arg7: memref<1x8x32xf32, #tpu.memory_space<vmem>>, %arg8: memref<8x32xbf16, #tpu.memory_space<vmem>>, %arg9: memref<8x64xbf16, #tpu.memory_space<vmem>>, %arg10: memref<8x32xf32, #tpu.memory_space<vmem>>) attributes {dimension_semantics = [#tpu.dimension_semantics<parallel>, #tpu.dimension_semantics<arbitrary>], iteration_bounds = array<i64: 2, 1>, scalar_prefetch = 0 : i64, scratch_operands = 3 : i64, tpu.core_type = #tpu.core_type<tc>, window_params = [{transform_indices = @transform_0, window_bounds = array<i64: 1, 8, 32>}, {pipeline_mode = #tpu.pipeline_mode<synchronous>, transform_indices = @transform_1, window_bounds = array<i64: 32, 32>}, {pipeline_mode = #tpu.pipeline_mode<synchronous>, transform_indices = @transform_2, window_bounds = array<i64: 1, 32>}, {pipeline_mode = #tpu.pipeline_mode<synchronous>, transform_indices = @transform_3, window_bounds = array<i64: 32, 64>}, {pipeline_mode = #tpu.pipeline_mode<synchronous>, transform_indices = @transform_4, window_bounds = array<i64: 1, 64>}, {transform_indices = @transform_5, window_bounds = array<i64: 1, 8, 32>}]} {
    %c0_i32 = arith.constant 0 : i32
    %0 = arith.cmpi eq, %arg1, %c0_i32 : i32
    %1 = arith.extui %0 : i1 to i32
    %c0_i32_0 = arith.constant 0 : i32
    %2 = arith.cmpi ne, %1, %c0_i32_0 : i32
    scf.if %2 {
      %c0_51 = arith.constant 0 : index
      %c0_52 = arith.constant 0 : index
      %c0_53 = arith.constant 0 : index
      %61 = vector.load %arg2[%c0_51, %c0_52, %c0_53] : memref<1x8x32xbf16, #tpu.memory_space<vmem>>, vector<1x8x32xbf16>
      %62 = vector.shape_cast %61 : vector<1x8x32xbf16> to vector<8x32xbf16>
      %c0_54 = arith.constant 0 : index
      %c0_55 = arith.constant 0 : index
      %63 = vector.load %arg5[%c0_54, %c0_55] : memref<32x64xbf16, #tpu.memory_space<vmem>>, vector<32x64xbf16>
      %cst_56 = arith.constant dense<0.000000e+00> : vector<8x64xf32>
      %64 = tpu.matmul %62, %63, %cst_56 {dimension_numbers = #tpu.dot_dimension_numbers<[1], [0], [0], [1], [0, 0, 1, 1], [], []>} : vector<8x32xbf16>, vector<32x64xbf16>, vector<8x64xf32> -> vector<8x64xf32>
      %c0_57 = arith.constant 0 : index
      %c0_58 = arith.constant 0 : index
      %65 = vector.load %arg6[%c0_57, %c0_58] : memref<1x64xf32, #tpu.memory_space<vmem>>, vector<1x64xf32>
      %66 = vector.broadcast %65 : vector<1x64xf32> to vector<8x64xf32>
      %67 = arith.addf %64, %66 : vector<8x64xf32>
      %68 = arith.truncf %67 : vector<8x64xf32> to vector<8x64xbf16>
      %c0_59 = arith.constant 0 : index
      %c0_60 = arith.constant 0 : index
      %69 = vector.load %arg9[%c0_59, %c0_60] : memref<8x64xbf16, #tpu.memory_space<vmem>>, vector<8x64xbf16>
      tpu.vector_store %arg9[%c0_59, %c0_60], %68 {strides = array<i32>} : memref<8x64xbf16, #tpu.memory_space<vmem>>, vector<8x64xbf16>,
    } else {
    }
    %c8_i32 = arith.constant 8 : i32
    %3 = arith.muli %arg1, %c8_i32 : i32
    %4 = tpu.assume_multiple %3, 8 : i32
    %c0 = arith.constant 0 : index
    %5 = arith.index_cast %4 : i32 to index
    %c0_1 = arith.constant 0 : index
    %6 = vector.load %arg2[%c0, %5, %c0_1] : memref<1x8x32xbf16, #tpu.memory_space<vmem>>, vector<1x8x32xbf16>
    %7 = vector.shape_cast %6 : vector<1x8x32xbf16> to vector<8x32xbf16>
    %c0_2 = arith.constant 0 : index
    %c0_3 = arith.constant 0 : index
    %8 = vector.load %arg3[%c0_2, %c0_3] : memref<32x32xbf16, #tpu.memory_space<vmem>>, vector<32x32xbf16>
    %cst = arith.constant dense<0.000000e+00> : vector<8x32xf32>
    %9 = tpu.matmul %7, %8, %cst {dimension_numbers = #tpu.dot_dimension_numbers<[1], [0], [0], [1], [0, 0, 1, 1], [], []>} : vector<8x32xbf16>, vector<32x32xbf16>, vector<8x32xf32> -> vector<8x32xf32>
    %c0_4 = arith.constant 0 : index
    %c0_5 = arith.constant 0 : index
    %10 = vector.load %arg4[%c0_4, %c0_5] : memref<1x32xf32, #tpu.memory_space<vmem>>, vector<1x32xf32>
    %11 = vector.broadcast %10 : vector<1x32xf32> to vector<8x32xf32>
    %12 = arith.addf %9, %11 : vector<8x32xf32>
    %cst_6 = arith.constant 0.353553385 : f32
    %13 = vector.broadcast %cst_6 : f32 to vector<8x32xf32>
    %14 = arith.mulf %12, %13 : vector<8x32xf32>
    %15 = arith.truncf %14 : vector<8x32xf32> to vector<8x32xbf16>
    %c0_7 = arith.constant 0 : index
    %c0_8 = arith.constant 0 : index
    %16 = vector.load %arg8[%c0_7, %c0_8] : memref<8x32xbf16, #tpu.memory_space<vmem>>, vector<8x32xbf16>
    tpu.vector_store %arg8[%c0_7, %c0_8], %15 {strides = array<i32>} : memref<8x32xbf16, #tpu.memory_space<vmem>>, vector<8x32xbf16>,
    %c0_9 = arith.constant 0 : index
    %c0_10 = arith.constant 0 : index
    %17 = vector.load %arg8[%c0_9, %c0_10] : memref<8x32xbf16, #tpu.memory_space<vmem>>, vector<8x8xbf16>
    %c0_11 = arith.constant 0 : index
    %c0_12 = arith.constant 0 : index
    %18 = vector.load %arg9[%c0_11, %c0_12] : memref<8x64xbf16, #tpu.memory_space<vmem>>, vector<8x8xbf16>
    %c0_13 = arith.constant 0 : index
    %c32 = arith.constant 32 : index
    %19 = vector.load %arg9[%c0_13, %c32] : memref<8x64xbf16, #tpu.memory_space<vmem>>, vector<8x8xbf16>
    %cst_14 = arith.constant dense<0.000000e+00> : vector<8x8xf32>
    %20 = tpu.matmul %17, %18, %cst_14 {dimension_numbers = #tpu.dot_dimension_numbers<[1], [1], [0], [0], [0, 0, 1, 0], [], []>} : vector<8x8xbf16>, vector<8x8xbf16>, vector<8x8xf32> -> vector<8x8xf32>
    %cst_15 = arith.constant 0.000000e+00 : f32
    %21 = vector.broadcast %cst_15 : f32 to vector<8x8xf32>
    %22 = arith.maximumf %20, %21 : vector<8x8xf32>
    %23 = arith.mulf %22, %22 : vector<8x8xf32>
    %24 = arith.truncf %23 : vector<8x8xf32> to vector<8x8xbf16>
    %cst_16 = arith.constant dense<0.000000e+00> : vector<8x8xf32>
    %25 = tpu.matmul %24, %19, %cst_16 {dimension_numbers = #tpu.dot_dimension_numbers<[1], [0], [0], [1], [0, 0, 1, 1], [], []>} : vector<8x8xbf16>, vector<8x8xbf16>, vector<8x8xf32> -> vector<8x8xf32>
    %c0_17 = arith.constant 0 : index
    %c0_18 = arith.constant 0 : index
    %26 = vector.load %arg10[%c0_17, %c0_18] : memref<8x32xf32, #tpu.memory_space<vmem>>, vector<8x8xf32>
    tpu.vector_store %arg10[%c0_17, %c0_18], %25 {strides = array<i32>} : memref<8x32xf32, #tpu.memory_space<vmem>>, vector<8x8xf32>,
    %c0_19 = arith.constant 0 : index
    %c8 = arith.constant 8 : index
    %27 = vector.load %arg8[%c0_19, %c8] : memref<8x32xbf16, #tpu.memory_space<vmem>>, vector<8x8xbf16>
    %c0_20 = arith.constant 0 : index
    %c8_21 = arith.constant 8 : index
    %28 = vector.load %arg9[%c0_20, %c8_21] : memref<8x64xbf16, #tpu.memory_space<vmem>>, vector<8x8xbf16>
    %c0_22 = arith.constant 0 : index
    %c40 = arith.constant 40 : index
    %29 = vector.load %arg9[%c0_22, %c40] : memref<8x64xbf16, #tpu.memory_space<vmem>>, vector<8x8xbf16>
    %cst_23 = arith.constant dense<0.000000e+00> : vector<8x8xf32>
    %30 = tpu.matmul %27, %28, %cst_23 {dimension_numbers = #tpu.dot_dimension_numbers<[1], [1], [0], [0], [0, 0, 1, 0], [], []>} : vector<8x8xbf16>, vector<8x8xbf16>, vector<8x8xf32> -> vector<8x8xf32>
    %cst_24 = arith.constant 0.000000e+00 : f32
    %31 = vector.broadcast %cst_24 : f32 to vector<8x8xf32>
    %32 = arith.maximumf %30, %31 : vector<8x8xf32>
    %33 = arith.mulf %32, %32 : vector<8x8xf32>
    %34 = arith.truncf %33 : vector<8x8xf32> to vector<8x8xbf16>
    %cst_25 = arith.constant dense<0.000000e+00> : vector<8x8xf32>
    %35 = tpu.matmul %34, %29, %cst_25 {dimension_numbers = #tpu.dot_dimension_numbers<[1], [0], [0], [1], [0, 0, 1, 1], [], []>} : vector<8x8xbf16>, vector<8x8xbf16>, vector<8x8xf32> -> vector<8x8xf32>
    %c0_26 = arith.constant 0 : index
    %c8_27 = arith.constant 8 : index
    %36 = vector.load %arg10[%c0_26, %c8_27] : memref<8x32xf32, #tpu.memory_space<vmem>>, vector<8x8xf32>
    tpu.vector_store %arg10[%c0_26, %c8_27], %35 {strides = array<i32>} : memref<8x32xf32, #tpu.memory_space<vmem>>, vector<8x8xf32>,
    %c0_28 = arith.constant 0 : index
    %c16 = arith.constant 16 : index
    %37 = vector.load %arg8[%c0_28, %c16] : memref<8x32xbf16, #tpu.memory_space<vmem>>, vector<8x8xbf16>
    %c0_29 = arith.constant 0 : index
    %c16_30 = arith.constant 16 : index
    %38 = vector.load %arg9[%c0_29, %c16_30] : memref<8x64xbf16, #tpu.memory_space<vmem>>, vector<8x8xbf16>
    %c0_31 = arith.constant 0 : index
    %c48 = arith.constant 48 : index
    %39 = vector.load %arg9[%c0_31, %c48] : memref<8x64xbf16, #tpu.memory_space<vmem>>, vector<8x8xbf16>
    %cst_32 = arith.constant dense<0.000000e+00> : vector<8x8xf32>
    %40 = tpu.matmul %37, %38, %cst_32 {dimension_numbers = #tpu.dot_dimension_numbers<[1], [1], [0], [0], [0, 0, 1, 0], [], []>} : vector<8x8xbf16>, vector<8x8xbf16>, vector<8x8xf32> -> vector<8x8xf32>
    %cst_33 = arith.constant 0.000000e+00 : f32
    %41 = vector.broadcast %cst_33 : f32 to vector<8x8xf32>
    %42 = arith.maximumf %40, %41 : vector<8x8xf32>
    %43 = arith.mulf %42, %42 : vector<8x8xf32>
    %44 = arith.truncf %43 : vector<8x8xf32> to vector<8x8xbf16>
    %cst_34 = arith.constant dense<0.000000e+00> : vector<8x8xf32>
    %45 = tpu.matmul %44, %39, %cst_34 {dimension_numbers = #tpu.dot_dimension_numbers<[1], [0], [0], [1], [0, 0, 1, 1], [], []>} : vector<8x8xbf16>, vector<8x8xbf16>, vector<8x8xf32> -> vector<8x8xf32>
    %c0_35 = arith.constant 0 : index
    %c16_36 = arith.constant 16 : index
    %46 = vector.load %arg10[%c0_35, %c16_36] : memref<8x32xf32, #tpu.memory_space<vmem>>, vector<8x8xf32>
    tpu.vector_store %arg10[%c0_35, %c16_36], %45 {strides = array<i32>} : memref<8x32xf32, #tpu.memory_space<vmem>>, vector<8x8xf32>,
    %c0_37 = arith.constant 0 : index
    %c24 = arith.constant 24 : index
    %47 = vector.load %arg8[%c0_37, %c24] : memref<8x32xbf16, #tpu.memory_space<vmem>>, vector<8x8xbf16>
    %c0_38 = arith.constant 0 : index
    %c24_39 = arith.constant 24 : index
    %48 = vector.load %arg9[%c0_38, %c24_39] : memref<8x64xbf16, #tpu.memory_space<vmem>>, vector<8x8xbf16>
    %c0_40 = arith.constant 0 : index
    %c56 = arith.constant 56 : index
    %49 = vector.load %arg9[%c0_40, %c56] : memref<8x64xbf16, #tpu.memory_space<vmem>>, vector<8x8xbf16>
    %cst_41 = arith.constant dense<0.000000e+00> : vector<8x8xf32>
    %50 = tpu.matmul %47, %48, %cst_41 {dimension_numbers = #tpu.dot_dimension_numbers<[1], [1], [0], [0], [0, 0, 1, 0], [], []>} : vector<8x8xbf16>, vector<8x8xbf16>, vector<8x8xf32> -> vector<8x8xf32>
    %cst_42 = arith.constant 0.000000e+00 : f32
    %51 = vector.broadcast %cst_42 : f32 to vector<8x8xf32>
    %52 = arith.maximumf %50, %51 : vector<8x8xf32>
    %53 = arith.mulf %52, %52 : vector<8x8xf32>
    %54 = arith.truncf %53 : vector<8x8xf32> to vector<8x8xbf16>
    %cst_43 = arith.constant dense<0.000000e+00> : vector<8x8xf32>
    %55 = tpu.matmul %54, %49, %cst_43 {dimension_numbers = #tpu.dot_dimension_numbers<[1], [0], [0], [1], [0, 0, 1, 1], [], []>} : vector<8x8xbf16>, vector<8x8xbf16>, vector<8x8xf32> -> vector<8x8xf32>
    %c0_44 = arith.constant 0 : index
    %c24_45 = arith.constant 24 : index
    %56 = vector.load %arg10[%c0_44, %c24_45] : memref<8x32xf32, #tpu.memory_space<vmem>>, vector<8x8xf32>
    tpu.vector_store %arg10[%c0_44, %c24_45], %55 {strides = array<i32>} : memref<8x32xf32, #tpu.memory_space<vmem>>, vector<8x8xf32>,
    %c0_46 = arith.constant 0 : index
    %c0_47 = arith.constant 0 : index
    %57 = vector.load %arg10[%c0_46, %c0_47] : memref<8x32xf32, #tpu.memory_space<vmem>>, vector<8x32xf32>
    %c0_48 = arith.constant 0 : index
    %c0_49 = arith.constant 0 : index
    %c0_50 = arith.constant 0 : index
    %58 = vector.load %arg7[%c0_48, %c0_49, %c0_50] : memref<1x8x32xf32, #tpu.memory_space<vmem>>, vector<1x8x32xf32>
    %59 = vector.shape_cast %58 : vector<1x8x32xf32> to vector<8x32xf32>
    %60 = vector.shape_cast %57 : vector<8x32xf32> to vector<1x8x32xf32>
    tpu.vector_store %arg7[%c0_48, %c0_49, %c0_50], %60 {strides = array<i32>} : memref<1x8x32xf32, #tpu.memory_space<vmem>>, vector<1x8x32xf32>,
    return
  }
  func.func @transform_0(%arg0: i32, %arg1: i32) -> (i32, i32, i32) {
    %c0_i32 = arith.constant 0 : i32
    %c0_i32_0 = arith.constant 0 : i32
    %c0_i32_1 = arith.constant 0 : i32
    return %arg0, %c0_i32, %c0_i32_0 : i32, i32, i32
  }
  func.func @transform_1(%arg0: i32, %arg1: i32) -> (i32, i32) {
    %c0_i32 = arith.constant 0 : i32
    %c0_i32_0 = arith.constant 0 : i32
    %c0_i32_1 = arith.constant 0 : i32
    return %c0_i32, %c0_i32_0 : i32, i32
  }
  func.func @transform_2(%arg0: i32, %arg1: i32) -> (i32, i32) {
    %c0_i32 = arith.constant 0 : i32
    %c0_i32_0 = arith.constant 0 : i32
    %c0_i32_1 = arith.constant 0 : i32
    return %c0_i32, %c0_i32_0 : i32, i32
  }
  func.func @transform_3(%arg0: i32, %arg1: i32) -> (i32, i32) {
    %c0_i32 = arith.constant 0 : i32
    %c0_i32_0 = arith.constant 0 : i32
    %c0_i32_1 = arith.constant 0 : i32
    return %c0_i32, %c0_i32_0 : i32, i32
  }
  func.func @transform_4(%arg0: i32, %arg1: i32) -> (i32, i32) {
    %c0_i32 = arith.constant 0 : i32
    %c0_i32_0 = arith.constant 0 : i32
    %c0_i32_1 = arith.constant 0 : i32
    return %c0_i32, %c0_i32_0 : i32, i32
  }
  func.func @transform_5(%arg0: i32, %arg1: i32) -> (i32, i32, i32) {
    %c0_i32 = arith.constant 0 : i32
    %c0_i32_0 = arith.constant 0 : i32
    return %arg0, %arg1, %c0_i32 : i32, i32, i32
  }
}

</mosaic_0001>

<bundles_post_ra>
// kernel: tpu_custom_call.1
= control target key start
LH: loop header
LB: loop body
LE: loop exit
PB: predicated region body
PF: predicated region fallthrough
CT: control target
= control target key end

     0   :  { %s1690_s0 = inlined_call_operand.hbm [shape: bf16[2,8,32], index: 0, kind: input, shape index: {}]   ;;  %s1691_s1 = inlined_call_operand.hbm [shape: bf16[32,32], index: 1, kind: input, shape index: {}]   ;;  %s1692_s2 = inlined_call_operand.vmem [shape: f32[1,32], index: 2, kind: input, shape index: {}]   ;;  %s1693_s3 = inlined_call_operand.hbm [shape: bf16[32,64], index: 3, kind: input, shape index: {}]   ;;  %s1694_s4 = inlined_call_operand.vmem [shape: f32[1,64], index: 4, kind: input, shape index: {}]   ;;  %s1695_s5 = inlined_call_operand.hbm [shape: f32[2,8,32], index: 5, kind: output, shape index: {}]  }
   0x1   :  { %1699 = sst [smem:[#allocation15_spill]] %s1691_s1 }
   0x2   :  { %10 = vsyncpa [#allocation6], 0 }
   0x3   :  { %12 = vsyncpa [#allocation6 + $0x1], 0 }
   0x4   :  { %13 = vsyncpa [#allocation9], 0 }
   0x5   :  { %14 = vsyncpa [#allocation7], 0 }
   0x6   :  { %16 = vsyncpa [#allocation7 + $0x1], 0  ;;  %s1451_s18 = smov 0   ;;  %s1453_s19 = smov 0  }
   0x7   :  { %s1455_s20 = smov 0   ;;  %s1457_s21 = smov 0  }
   0x8   :  { %s1459_s22 = smov 0   ;;  %s1461_s23 = smov 0  }
   0x9 LB: > { %s1003_s24 = sadd.s32 4294967295, %s1401_s23   ;;  %s1004_s25 = sadd.s32 4294967294, %s1401_s23   ;;  %s1401_s23 = sphi %s1461_s23, %s22_s23   ;;  %s1397_s22 = sphi %s1459_s22, %s1717_s22   ;;  %s1393_s21 = sphi %s1457_s21, %s1716_s21   ;;  %s1389_s20 = sphi %s1455_s20, %s1715_s20   ;;  %s1385_s19 = sphi %s1453_s19, %s1714_s19   ;;  %s1381_s18 = sphi %s1451_s18, %s1713_s18  }
   0xa   : > { %p54_p0 = scmp.ne.s32.totalorder %s1385_s19, %s1381_s18  ;;  %p1485_p1 = scmp.eq.s32.totalorder %s1003_s24, 0 }
   0xb   : > { %p1489_p2 = scmp.eq.s32.totalorder %s1003_s24, 1  ;;  %p170_p3 = scmp.eq.s32.totalorder %s1004_s25, 1 }
   0xc   : > { %s1700_s26 = scalar_select %p1485_p1, 1, 0 }
   0xd   : > { %p1495_p4 = por %p1485_p1, %p54_p0  ;;  %p1005_p5 = scmp.ge.s32.totalorder %s1401_s23, 1 }
   0xe   : > { %p1500_p6 = por %p170_p3, %p54_p0  ;;  %p177_p7 = scmp.lt.s32.totalorder %s1401_s23, 3 }
   0xf   : > { %s1702_s28 = scalar_select %p1495_p4, 1, 0 }
  0x10   : > { %s1703_s29 = scalar_select %p1500_p6, 1, 0 }
  0x11   : > { %p1505_p8 = pnand %p1005_p5, %p177_p7  ;;  %s1403_s6 = smov [#allocation8]  }
  0x12   : > { %s189_s7 = sshll.u32 %s1403_s6, 4  ;;  %s1404_s9 = smov [#allocation10]   ;;  %s190_s7 = int_to_ptr.vmem [resolvable:$true] %s189_s7 }
  0x13   : > { %p1141_p9 = pneg %p1505_p8  ;;  %s205_s10 = sshll.u32 %s1404_s9, 4  ;;  %s206_s10 = int_to_ptr.vmem [resolvable:$true] %s205_s10 }
  0x14   : > { %s1248_s11 = scalar_lea.vmem %s190_s7, 256  ;;  %p1256_p5 = scmp.lt.s32.totalorder %s190_s7, %s190_s7 }
  0x15   : > { %p1514_p11 = pnand %p1141_p9, %p1485_p1  ;;  %p1249_p13 = scmp.ne.s32.totalorder %s190_s7, %s1248_s11 }
  0x16   : > { %p1257_p7 = scmp.lt.s32.totalorder %s1248_s11, %s1248_s11 }
  0x17   : > { %p1239_p12 = pneg %p1514_p11 }
  0x18   : > { %p1258_p10 = por %p1257_p7, %p1256_p5 }
  0x19   : > { %p1251_p0 = pnand %p1249_p13, %p1239_p12 }
  0x1b   : > { %p1252_p3 = pneg %p1251_p0 }
  0x1d   : > { %p1259_p9 = pnand %p1258_p10, %p1252_p3 }
  0x1f   : > { %1262 = shalt.err (!%p1259_p9)
}
  0x20   : > { %s1405_s12 = smov 64   ;;  %s1406_s13 = smov 4  }
  0x21   : > { %s1706_s1 = sld [smem:[#allocation15_spill]]  ;;  %s1274_s16 = scalar_lea.vmem %s206_s10, 256 }
  0x22   : > { %p1275_p6 = scmp.ne.s32.totalorder %s206_s10, %s1274_s16  ;;  %p1282_p1 = scmp.lt.s32.totalorder %s206_s10, %s206_s10 }
  0x23   : > { %p1283_p4 = scmp.lt.s32.totalorder %s1274_s16, %s1274_s16 }
  0x24   : > { %p1277_p13 = pnand %p1275_p6, %p1239_p12 }
  0x25   : > { %p1284_p5 = por %p1283_p4, %p1282_p1 }
  0x26   : > { %p1278_p0 = pneg %p1277_p13 }
  0x27   : > { %1144 = dma.hbm_to_vmem [thread:$0]  (!%p1514_p11), %s1706_s1, 256, %s190_s7, [#allocation9], %s1405_s12, %s1405_s12, %s1406_s13  }
  0x28   : > { %p1285_p10 = pnand %p1284_p5, %p1278_p0 }
  0x2a   : > { %1288 = shalt.err (!%p1285_p10)
}
  0x2b   : > { %1147 = dma.hbm_to_vmem [thread:$0]  (!%p1514_p11), %s1693_s3, 256, %s206_s10, [#allocation9], %s1405_s12, %s1405_s12, %s1406_s13  }
  0x2c   : > { %s34_s25 = sadd.s32 1, %s1397_s22  ;;  %s41_s6 = sadd.s32 1, %s1389_s20 }
  0x2d   : > { %p36_p1 = scmp.ge.s32.totalorder %s34_s25, 2  ;;  %p48_p4 = scmp.ne.s32.totalorder %s1389_s20, %s1385_s19 }
  0x2e   : > { %p49_p6 = scmp.eq.s32.totalorder %s1401_s23, 0  ;;  %p1158_p12 = scmp.lt.s32.totalorder %s1401_s23, 2 }
  0x2f   : > { %s1719_s25 = smov (%p36_p1, %s34_s25), 0  ;;  %p1546_p7 = por %p1489_p2, %p48_p4 }
  0x30   : > { %p50_p3 = por %p49_p6, %p48_p4  ;;  %s38_s8 = ssub.s32 %s1397_s22, %s1719_s25 }
  0x31   : > { %s222_s9 = sand.u32 1, %s1389_s20   ;;  %p39_p9 = scmp.eq.s32.totalorder %s38_s8, 0 }
  0x32   : > { %s1009_s10 = sshll.u32 %s222_s9, 2  ;;  %s1010_s11 = sshll.u32 %s1397_s22, 6 }
  0x33   : > { %s1555_s12 = scalar_select %p39_p9, %s1389_s20, %s41_s6  }
  0x34   : > { %s231_s15 = scalar_lea.hbm %s1690_s0, %s1010_s11  ;;  %s226_s16 = scalar_lea.vmem [#allocation5], %s1009_s10 }
  0x35   : > { %s233_s17 = sshll.u32 %s226_s16, 4  ;;  %p1562_p11 = pnand %p1158_p12, %p50_p3  ;;  %s234_s17 = int_to_ptr.vmem [resolvable:$true] %s233_s17 }
  0x36   : > { %s223_s24 = scalar_lea.sflag [#allocation6], %s222_s9  ;;  %s1302_s8 = scalar_lea.vmem %s234_s17, 64 }
  0x37   : > { %p1291_p2 = pneg %p1562_p11  ;;  %p1303_p13 = scmp.ne.s32.totalorder %s234_s17, %s1302_s8 }
  0x38   : > { %s1407_s6 = smov [#allocation5]  }
  0x39   : > { %p1305_p0 = pnand %p1303_p13, %p1291_p2  ;;  %s1307_s1 = sshll.u32 %s1407_s6, 4  ;;  %s1308_s1 = int_to_ptr.vmem [resolvable:$false] %s1307_s1 }
  0x3a   : > { %s1309_s11 = scalar_lea.vmem %s1308_s1, 128  ;;  %p1310_p10 = scmp.lt.s32.totalorder %s234_s17, %s1308_s1 }
  0x3b   : > { %p1306_p5 = pneg %p1305_p0  ;;  %p1311_p1 = scmp.lt.s32.totalorder %s1309_s11, %s1302_s8 }
  0x3d   : > { %p1312_p4 = por %p1311_p1, %p1310_p10 }
  0x3f   : > { %p1313_p6 = pnand %p1312_p4, %p1306_p5 }
  0x41   : > { %1316 = shalt.err (!%p1313_p6)
}
  0x42   : > { %1151 = dma.hbm_to_vmem [thread:$0]  (!%p1562_p11), %s231_s15, 64, %s234_s17, %s223_s24  }
  0x43   : > { %242 = sbr.rel (%p1505_p8) target bundleno = 960 (0x3c0), region = 40  ;;  %s1573_s9 = sand.u32 (!%p1505_p8), 1, %s1385_s19  }
  0x44   : > { %s1012_s10 = sshll.u32 (!%p1505_p8), %s1573_s9, 2  ;;  %s245_s13 = scalar_lea.sflag (!%p1505_p8), [#allocation6], %s1573_s9 }
  0x45   : > { %s248_s14 = scalar_lea.vmem (!%p1505_p8), [#allocation5], %s1012_s10  ;;  %p1709_p12 = scmp.ne.s32.totalorder (!%p1505_p8), %s1702_s28, 0 }
  0x48   : > { %1368 = dma.done.wait (%p1709_p12), %s245_s13, 64  }
  0x49   : > { %1370 = vsyncadd (%p1709_p12), %s245_s13, 4294967232  ;;  %p1710_p3 = scmp.ne.s32.totalorder %s1700_s26, 0 }
  0x4b   : > { %1372 = dma.done.wait (%p1710_p3), [#allocation9], 512  }
  0x4c   : > { %1374 = vsyncadd (%p1710_p3), [#allocation9], 4294966784  ;;  %v1408_v0 = vmov 0.0   ;;  %vm1409_vm0 = vmmov 0   ;;  %v1226_v1 = vld [vmem:[#allocation10 + $0x8] sm:$0xff]   ;;  %v1227_v2 = vld [vmem:[#allocation8 + $0x8] sm:$0xff]  }
  0x4d   : > { %1065 = vmatprep.subr.bf16.mxu0 %v1408_v0  ;;  %1073 = vmatprep.subr.bf16.mxu1 %v1408_v0  ;;  %v1228_v3 = vld [vmem:[#allocation10] sm:$0xff]   ;;  %v1229_v4 = vld [vmem:[#allocation8] sm:$0xff]   ;;  %v288_v5 = vld [vmem:[%s248_s14] sm:$0xf]  ;;  %vm312_vm1 = vcmask 261120   ;;  %vm357_vm2 = vcmask 519168  }
  0x4e   : > { %1069 = vmatprep.mubr.msk.bf16.mxu0 %vm1409_vm0, %v1408_v0  ;;  %1077 = vmatprep.mubr.msk.bf16.mxu1 %vm1409_vm0, %v1408_v0  ;;  %v364_v6 = vld [vmem:[%s248_s14] sm:$0xf]  ;;  %v1016_v7 = vld [vmem:[%s1694_s4] ss:$0 sm:$0xff]  ;;  %vm434_vm3 = vcmask 257024   ;;  %vm438_vm4 = vcmask 64512  }
  0x4f   : > { %1066 = vmatpush3.bf16.msra.mxu0 %v1226_v1  ;;  %1074 = vmatpush3.bf16.msra.mxu1 %v1227_v2  ;;  %v1020_v8 = vld [vmem:[%s1692_s2] ss:$0 sm:$0xff]  ;;  %s1410_s15 = smov 112   ;;  %s1411_s16 = smov 120   ;;  %vm496_vm5 = vcmask 1043456   ;;  %vm654_vm6 = vcmask 130112  }
  0x50   : > { %1067 = vmatprep.subr.bf16.mxu0 %v1408_v0  ;;  %1075 = vmatprep.subr.bf16.mxu1 %v1408_v0  ;;  %s1412_s17 = smov 104   ;;  %s1413_s27 = smov 88   ;;  %vm769_vm7 = vcmask 195712   ;;  %vm884_vm8 = vcmask 261312  }
  0x51   : > { %s1414_s24 = smov 96   ;;  %s1415_s8 = smov 72  }
  0x52   : > { %s1416_s6 = smov 80   ;;  %s1417_s11 = smov 8  }
  0x53   : > { %1068 = vmatpush3.bf16.msra.mxu0 %v1228_v3  ;;  %1076 = vmatpush3.bf16.msra.mxu1 %v1229_v4  ;;  %s1418_s10 = smov 16   ;;  %s1419_s13 = smov 24  }
  0x54   : > { %1081 = vmatprep.subr.bf16.mxu0 %v1408_v0  ;;  %1087 = vmatprep.subr.bf16.mxu1 %v1408_v0  ;;  %s1015_s14 = sshll.u32 %s1573_s9, 3  ;;  %s1040_s1 = sshll.u32 %s1393_s21, 7 }
  0x55   : > { %s282_s26 = scalar_lea.vmem [#allocation11], %s1015_s14 }
  0x56   : > { %1070 = vmatmul.mubr.msk.bf16.vlgmr.msra.gmra.mxu0 %vm312_vm1, %v288_v5  ;;  %1078 = vmatmul.mubr.msk.bf16.vlgmr.msra.gmra.mxu1 %vm312_vm1, %v364_v6  ;;  %s903_s28 = sshll.u32 %s282_s26, 4  ;;  %s904_s28 = int_to_ptr.vmem [resolvable:$true] %s903_s28 }
  0x57   : > { %1083 = vmatprep.mubr.msk.bf16.mxu0 %vm1409_vm0, %v1408_v0  ;;  %1089 = vmatprep.mubr.msk.bf16.mxu1 %vm1409_vm0, %v1408_v0 }
 0x116   : > { %v350_v9 = vpop.f32.mrf.mxu0  ;;  %v426_v11 = vpop.f32.mrf.mxu1 }
 0x117   : > { %v351_v10 = vadd.f32 %v1016_v7, %v350_v9  ;;  %v427_v12 = vadd.f32 %v1020_v8, %v426_v11 }
 0x118   : > { %v1071_v13 = vpop.f32.mrf.mxu0  ;;  %v1079_v15 = vpop.f32.mrf.mxu1 }
 0x119   : > { %v356_v14 = vpack.c.bf16 %v351_v10, %v351_v10  ;;  %v432_v16 = vmul.f32 0.35355338, %v427_v12 }
 0x11a   : > { %v353_v17 = vpop.f32.mrf.mxu0  ;;  %v429_v18 = vpop.f32.mrf.mxu1 }
 0x11b   : > { %358 = vst.msk [vmem:[#allocation3] sm:$0xf] %vm357_vm2, %v356_v14  ;;  %v433_v19 = vpack.c.bf16 %v432_v16, %v432_v16 }
 0x11c   : > { %v1072_v20 = vpop.f32.mrf.mxu0  ;;  %v1080_v21 = vpop.f32.mrf.mxu1 }
 0x11d   : > { %435 = vst.msk [vmem:[#allocation2] sm:$0xf] %vm434_vm3, %v433_v19 }
 0x122   : > { %v437_v22 = vld [vmem:[#allocation3] sm:$0xf] }
 0x123   : > { %v1230_v23 = vld [vmem:[#allocation3] ss:$0 sps:$4 sm:$0xff]   ;;  %v443_v24 = vsel %vm438_vm4, %v437_v22, 0  ;;  %v1025_v31 = vcombine.low %v437_v22, %v437_v22 }
 0x124   : > { %v1231_v25 = vld [vmem:[#allocation3] ss:$0 sps:$4 sm:$0xff]   ;;  %1082 = vmatpush3.bf16.xpose.msra.mxu0 %v443_v24  ;;  %666 = vrot.lane.b32.xlu1 %v1230_v23, %s1410_s15  ;;  %v1232_v26 = vld [vmem:[#allocation2] ss:$0 sps:$4 sm:$0xff]  }
 0x125   : > { %551 = vrot.lane.b32.xlu0 %v1231_v25, %s1411_s16  ;;  %1093 = vmatprep.subr.bf16.mxu0 %v1408_v0  ;;  %v1233_v27 = vld [vmem:[#allocation2] ss:$0 sps:$4 sm:$0xff]   ;;  %v1235_v30 = vld [vmem:[#allocation3] ss:$0 sps:$4 sm:$0xff]  }
 0x126   : > { %v436_v28 = vld [vmem:[#allocation2] sm:$0xf] }
 0x127   : > { %v1234_v29 = vld [vmem:[#allocation2] ss:$0 sps:$4 sm:$0xff]  }
 0x128   : > { %661 = vrot.lane.b32.xlu1 %v1232_v26, %s1410_s15 }
 0x129   : > { %546 = vrot.lane.b32.xlu0 %v1233_v27, %s1411_s16  ;;  %s1647_s16 = scalar_lea.hbm %s1695_s5, %s1040_s1 }
 0x12b   : > { %1084 = vmatmul.mubr.msk.bf16.vlgmr.msra.gmra.mxu0 %vm438_vm4, %v436_v28 }
 0x12c   : > { %776 = vrot.lane.b32.xlu1 %v1234_v29, %s1412_s17  ;;  %1095 = vmatprep.mubr.msk.bf16.mxu0 %vm1409_vm0, %v1408_v0 }
 0x12d   : > { %781 = vrot.lane.b32.xlu0 %v1235_v30, %s1412_s17  ;;  %s889_s17 = scalar_lea.sflag [#allocation7], %s1573_s9 }
 0x130   : > { %602 = vrot.lane.b32.xlu1 %v1231_v25, %s1413_s27  ;;  %s1317_s27 = scalar_lea.vmem %s904_s28, 128 }
 0x131   : > { %491 = vrot.lane.b32.xlu0 %v1025_v31, %s1414_s24  ;;  %p1318_p8 = scmp.ne.s32.totalorder %s904_s28, %s1317_s27  ;;  %s1420_s24 = smov [#allocation11]  }
 0x133   : > { %p1319_p9 = pnand %p1318_p8, %p1546_p7 }
 0x134   : > { %832 = vrot.lane.b32.xlu1 %v1235_v30, %s1415_s8  ;;  %s1321_s8 = sshll.u32 %s1420_s24, 4  ;;  %s1322_s8 = int_to_ptr.vmem [resolvable:$false] %s1321_s8 }
 0x135   : > { %717 = vrot.lane.b32.xlu0 %v1230_v23, %s1416_s6  ;;  %p1320_p11 = pneg %p1319_p9  ;;  %s1323_s21 = scalar_lea.vmem %s1322_s8, 256 }
 0x136   : > { %p1324_p2 = scmp.lt.s32.totalorder %s904_s28, %s1322_s8  ;;  %p1325_p13 = scmp.lt.s32.totalorder %s1323_s21, %s1317_s27 }
 0x138   : > { %p1326_p0 = por %p1325_p13, %p1324_p2 }
 0x13a   : > { %p1327_p5 = pnand %p1326_p0, %p1320_p11 }
 0x196   : > { %v667_v35 = vpop.permute.xlu1 %666 }
 0x197   : > { %v552_v32 = vpop.permute.xlu0 %551  ;;  %v672_v37 = vsel %vm438_vm4, %v667_v35, 0 }
 0x198   : > { %v557_v33 = vsel %vm438_vm4, %v552_v32, 0 }
 0x199   : > { %1094 = vmatpush3.bf16.xpose.msra.mxu0 %v557_v33 }
 0x19a   : > { %1105 = vmatprep.subr.bf16.mxu0 %v1408_v0  ;;  %v662_v40 = vpop.permute.xlu1 %661 }
 0x19b   : > { %v547_v34 = vpop.permute.xlu0 %546 }
 0x19e   : > { %v777_v42 = vpop.permute.xlu1 %776 }
 0x19f   : > { %v782_v36 = vpop.permute.xlu0 %781 }
 0x1a0   : > { %1096 = vmatmul.mubr.msk.bf16.vlgmr.msra.gmra.mxu0 %vm438_vm4, %v547_v34  ;;  %v787_v41 = vsel %vm438_vm4, %v782_v36, 0 }
 0x1a1   : > { %1106 = vmatpush3.bf16.xpose.msra.mxu0 %v672_v37  ;;  %1107 = vmatprep.mubr.msk.bf16.mxu0 %vm1409_vm0, %v1408_v0 }
 0x1a2   : > { %1117 = vmatprep.subr.bf16.mxu0 %v1408_v0  ;;  %v603_v47 = vpop.permute.xlu1 %602 }
 0x1a3   : > { %v492_v38 = vpop.permute.xlu0 %491  ;;  %v608_v51 = vsel %vm496_vm5, %v603_v47, 0 }
 0x1a4   : > { %v498_v39 = vsel %vm496_vm5, %v492_v38, 0 }
 0x1a5   : > { %1088 = vmatpush3.bf16.msra.mxu1 %v498_v39 }
 0x1a6   : > { %1099 = vmatprep.subr.bf16.mxu1 %v1408_v0  ;;  %v833_v2 = vpop.permute.xlu1 %832 }
 0x1a7   : > { %v718_v56 = vpop.permute.xlu0 %717  ;;  %v838_v6 = vsel %vm496_vm5, %v833_v2, 0 }
 0x1a8   : > { %1108 = vmatmul.mubr.msk.bf16.vlgmr.msra.gmra.mxu0 %vm438_vm4, %v662_v40  ;;  %v723_v60 = vsel %vm496_vm5, %v718_v56, 0 }
 0x1a9   : > { %1118 = vmatpush3.bf16.xpose.msra.mxu0 %v787_v41  ;;  %1119 = vmatprep.mubr.msk.bf16.mxu0 %vm1409_vm0, %v1408_v0 }
 0x1b0   : > { %1120 = vmatmul.mubr.msk.bf16.vlgmr.msra.gmra.mxu0 %vm438_vm4, %v777_v42 }
 0x1eb   : > { %v479_v43 = vpop.f32.mrf.mxu0 }
 0x1ec   : > { %v485_v44 = vmax.f32 %v479_v43, 0.0 }
 0x1ed   : > { %v1085_v45 = vpop.f32.mrf.mxu0 }
 0x1ee   : > { %v486_v46 = vmul.f32 %v485_v44, %v485_v44 }
 0x1ef   : > { %v482_v48 = vpop.f32.mrf.mxu0 }
 0x1f0   : > { %v487_v49 = vpack.c.bf16 %v486_v46, %v486_v46 }
 0x1f1   : > { %v1086_v50 = vpop.f32.mrf.mxu0 }
 0x1f2   : > { %1090 = vmatmul.mubr.msk.bf16.vlgmr.msra.gmra.mxu1 %vm438_vm4, %v487_v49 }
 0x1f3   : > { %1100 = vmatpush3.bf16.msra.mxu1 %v608_v51  ;;  %1101 = vmatprep.mubr.msk.bf16.mxu1 %vm1409_vm0, %v1408_v0 }
 0x1f4   : > { %1111 = vmatprep.subr.bf16.mxu1 %v1408_v0 }
 0x260   : > { %v593_v52 = vpop.f32.mrf.mxu0 }
 0x261   : > { %v599_v53 = vmax.f32 %v593_v52, 0.0 }
 0x262   : > { %v1097_v54 = vpop.f32.mrf.mxu0 }
 0x263   : > { %v600_v55 = vmul.f32 %v599_v53, %v599_v53 }
 0x264   : > { %v596_v57 = vpop.f32.mrf.mxu0 }
 0x265   : > { %v601_v58 = vpack.c.bf16 %v600_v55, %v600_v55 }
 0x266   : > { %v1098_v59 = vpop.f32.mrf.mxu0 }
 0x267   : > { %1102 = vmatmul.mubr.msk.bf16.vlgmr.msra.gmra.mxu1 %vm438_vm4, %v601_v58 }
 0x268   : > { %1112 = vmatpush3.bf16.msra.mxu1 %v723_v60  ;;  %v708_v61 = vpop.f32.mrf.mxu0  ;;  %1113 = vmatprep.mubr.msk.bf16.mxu1 %vm1409_vm0, %v1408_v0 }
 0x269   : > { %v714_v62 = vmax.f32 %v708_v61, 0.0  ;;  %1123 = vmatprep.subr.bf16.mxu1 %v1408_v0 }
 0x26a   : > { %v1109_v63 = vpop.f32.mrf.mxu0 }
 0x26b   : > { %v715_v1 = vmul.f32 %v714_v62, %v714_v62 }
 0x26c   : > { %v711_v3 = vpop.f32.mrf.mxu0 }
 0x26d   : > { %v716_v4 = vpack.c.bf16 %v715_v1, %v715_v1 }
 0x26e   : > { %v1110_v5 = vpop.f32.mrf.mxu0 }
 0x26f   : > { %1114 = vmatmul.mubr.msk.bf16.vlgmr.msra.gmra.mxu1 %vm438_vm4, %v716_v4 }
 0x270   : > { %1124 = vmatpush3.bf16.msra.mxu1 %v838_v6  ;;  %v823_v7 = vpop.f32.mrf.mxu0  ;;  %1125 = vmatprep.mubr.msk.bf16.mxu1 %vm1409_vm0, %v1408_v0 }
 0x271   : > { %v829_v8 = vmax.f32 %v823_v7, 0.0 }
 0x272   : > { %v1121_v9 = vpop.f32.mrf.mxu0 }
 0x273   : > { %v830_v10 = vmul.f32 %v829_v8, %v829_v8 }
 0x274   : > { %v826_v11 = vpop.f32.mrf.mxu0 }
 0x275   : > { %v831_v12 = vpack.c.bf16 %v830_v10, %v830_v10 }
 0x276   : > { %v1122_v13 = vpop.f32.mrf.mxu0 }
 0x277   : > { %1126 = vmatmul.mubr.msk.bf16.vlgmr.msra.gmra.mxu1 %vm438_vm4, %v831_v12 }
 0x2b2   : > { %v534_v14 = vpop.f32.mrf.mxu1 }
 0x2b3   : > { %540 = vst.msk [vmem:[#allocation4] sm:$0xff] %vm438_vm4, %v534_v14 }
 0x2b4   : > { %v1091_v15 = vpop.f32.mrf.mxu1 }
 0x2b6   : > { %v537_v16 = vpop.f32.mrf.mxu1 }
 0x2b8   : > { %v1092_v17 = vpop.f32.mrf.mxu1 }
 0x327   : > { %v644_v18 = vpop.f32.mrf.mxu1 }
 0x328   : > { %651 = vrot.lane.b32.xlu0 %v644_v18, %s1417_s11 }
 0x329   : > { %v1103_v19 = vpop.f32.mrf.mxu1 }
 0x32b   : > { %v647_v20 = vpop.f32.mrf.mxu1 }
 0x32d   : > { %v1104_v0 = vpop.f32.mrf.mxu1 }
 0x32f   : > { %v759_v21 = vpop.f32.mrf.mxu1 }
 0x330   : > { %766 = vrot.lane.b32.xlu1 %v759_v21, %s1418_s10 }
 0x331   : > { %v1115_v22 = vpop.f32.mrf.mxu1 }
 0x333   : > { %v762_v23 = vpop.f32.mrf.mxu1 }
 0x335   : > { %v1116_v24 = vpop.f32.mrf.mxu1 }
 0x337   : > { %v874_v25 = vpop.f32.mrf.mxu1 }
 0x338   : > { %881 = vrot.lane.b32.xlu0 %v874_v25, %s1419_s13 }
 0x339   : > { %v1127_v26 = vpop.f32.mrf.mxu1 }
 0x33b   : > { %v877_v27 = vpop.f32.mrf.mxu1 }
 0x33d   : > { %v1128_v28 = vpop.f32.mrf.mxu1 }
 0x39a   : > { %v652_v29 = vpop.permute.xlu0 %651 }
 0x39b   : > { %655 = vst.msk [vmem:[#allocation4] sm:$0xff] %vm654_vm6, %v652_v29 }
 0x3a2   : > { %v767_v30 = vpop.permute.xlu1 %766 }
 0x3a3   : > { %770 = vst.msk [vmem:[#allocation4] sm:$0xff] %vm769_vm7, %v767_v30 }
 0x3aa   : > { %v882_v31 = vpop.permute.xlu0 %881 }
 0x3ab   : > { %885 = vst.msk [vmem:[#allocation4] sm:$0xff] %vm884_vm8, %v882_v31 }
 0x3b2   : > { %v886_v32 = vld [vmem:[#allocation4] sm:$0xff] }
 0x3b3   : > { %887 = vst.msk [vmem:[%s282_s26] sm:$0xff] %vm312_vm1, %v886_v32 }
 0x3b4   : > { %1330 = shalt.err (!%p1327_p5)
}
 0x3b5   : > { %s1331_s6 = scalar_lea.hbm %s1647_s16, 128  ;;  %s1335_s10 = scalar_lea.hbm %s1695_s5, 256 }
 0x3b6   : > { %p1332_p10 = scmp.ne.s32.totalorder %s1647_s16, %s1331_s6  ;;  %p1336_p6 = scmp.lt.s32.totalorder %s1647_s16, %s1695_s5 }
 0x3b7   : > { %p1337_p12 = scmp.lt.s32.totalorder %s1335_s10, %s1331_s6 }
 0x3b8   : > { %p1333_p1 = pnand %p1332_p10, %p1546_p7 }
 0x3b9   : > { %p1338_p3 = por %p1337_p12, %p1336_p6 }
 0x3ba   : > { %p1334_p4 = pneg %p1333_p1 }
 0x3bc   : > { %p1339_p8 = pnand %p1338_p3, %p1334_p4 }
 0x3be   : > { %1342 = shalt.err (!%p1339_p8)
}
 0x3bf   : > { %1139 = dma.vmem_to_hbm [thread:$0]  (%p1546_p7), %s904_s28, 128, %s1647_s16, %s889_s17  }
 0x3c0 PF: > { %s915_s1 = sand.u32 1, %s1381_s18   ;;  %p1711_p9 = scmp.ne.s32.totalorder %s1703_s29, 0 }
 0x3c1   : > { %p1712_p11 = scmp.ge.s32.totalorder %s1401_s23, 2  ;;  %s916_s26 = scalar_lea.sflag [#allocation7], %s915_s1 }
 0x3c3   : > { %p1153_p2 = pnand %p1712_p11, %p1711_p9 }
 0x3c5   : > { %p1154_p13 = pneg %p1153_p2 }
 0x3c7   : > { %1376 = dma.done.wait (%p1154_p13), %s916_s26, 128  }
 0x3c8   : > { %1378 = vsyncadd (%p1154_p13), %s916_s26, 4294967168  ;;  %s22_s23 = sadd.s32 1, %s1401_s23   ;;  %s1713_s18 = smov %s1385_s19 }
 0x3c9   : > { %p19_p0 = scmp.ge.s32.totalorder %s22_s23, 4   ;;  %s1714_s19 = smov %s1389_s20 }
 0x3ca   : > { %s1715_s20 = smov %s1555_s12  ;;  %s1716_s21 = smov %s1397_s22 }
 0x3cb   : > { %s1717_s22 = smov %s1719_s25  ;;  %21 = sbr.rel (!%p19_p0) target bundleno = 9 (0x9), region = 98 }
 0x3d0   :  { %921 = vsyncpa [#allocation6], 1 }
 0x3d1   :  { %923 = vsyncpa [#allocation6 + $0x1], 1 }
 0x3d2   :  { %924 = vsyncpa [#allocation9], 1 }
 0x3d3   :  { %925 = vsyncpa [#allocation7], 1 }
 0x3d4   :  { %927 = vsyncpa [#allocation7 + $0x1], 1 }

</bundles_post_ra>
